<compile_context>
chip_gen: v5e
topology: v5e:2x2
jax: 0.10.0
libtpu: 0.0.40
codegen_flags: <defaults>
</compile_context>

<pallas_src>
import functools

import jax
import jax.numpy as jnp
from jax.experimental import pallas as pl
from jax.experimental.pallas import tpu as pltpu

_MAX_TM = 512   # row-tile cap for standalone conv GEMMs (multiple of 8/16 sublanes)
_MAX_TB = 256   # batch-tile cap for the fused conv+dense tail kernel


def _row_tiling(m: int, cap: int):
    """Pick the row tile: full array if it fits, else `cap`-row tiles."""
    if m <= cap:
        return m, 1
    return cap, pl.cdiv(m, cap)


# ----------------------------- Pallas kernels ---------------------------------
def _conv_gemm_kernel(x_ref, w_ref, b_ref, o_ref):
    # y = leaky_relu(x @ w + b); BN scale pre-folded into w, BN shift into b.
    y = jnp.dot(x_ref[...], w_ref[...], preferred_element_type=jnp.float32)
    y = y + b_ref[...]
    o_ref[...] = jnp.where(y >= 0.0, y, 0.01 * y)


def _conv_dense_tail_kernel(p_ref, wc_ref, bc_ref, w1_ref, b1_ref, w2_ref, b2_ref,
                            o_ref, *, tb, spatial):
    # Last conv layer: GEMM + folded-BN bias + LeakyReLU.
    y = jnp.dot(p_ref[...], wc_ref[...], preferred_element_type=jnp.float32)
    y = y + bc_ref[...]
    y = jnp.where(y >= 0.0, y, 0.01 * y)
    # (tb*spatial, C) -> (tb, spatial*C): exactly the NDHWC flatten (matches the
    # pre-permuted dense_hidden columns).  Tiny in-VMEM relayout; a no-op when
    # spatial == 1 (the common case for deep conv stacks).
    c = wc_ref.shape[1]
    flat = y.reshape(tb, spatial * c)
    # dense_hidden + LeakyReLU (Dropout is identity in eval) + dense_output.
    h = jnp.dot(flat.astype(w1_ref.dtype), w1_ref[...],
                preferred_element_type=jnp.float32)
    h = h + b1_ref[...]
    h = jnp.where(h >= 0.0, h, 0.01 * h)
    out = jnp.dot(h.astype(w2_ref.dtype), w2_ref[...],
                  preferred_element_type=jnp.float32)
    o_ref[...] = out + b2_ref[...]


# ----------------------------- kernel wrappers ---------------------------------
def fused_conv_gemm(x, w, b):
    """leaky_relu(x @ w + b).  x: (M,K) bf16, w: (K,N) bf16, b: (1,N) f32 -> (M,N) f32."""
    M, K = x.shape
    _, N = w.shape
    TM, grid_m = _row_tiling(M, _MAX_TM)
    return pl.pallas_call(
        _conv_gemm_kernel,
        out_shape=jax.ShapeDtypeStruct((M, N), jnp.float32),
        grid=(grid_m,),
        in_specs=[
            pl.BlockSpec((TM, K), lambda i: (i, 0)),
            pl.BlockSpec((K, N), lambda i: (0, 0)),
            pl.BlockSpec((1, N), lambda i: (0, 0)),
        ],
        out_specs=pl.BlockSpec((TM, N), lambda i: (i, 0)),
        compiler_params=pltpu.CompilerParams(
            dimension_semantics=("parallel",)),
    )(x, w, b)


def fused_conv_dense_tail(patches, wc, bc, w1, b1, w2, b2, *, batch, spatial):
    """Last conv GEMM + LeakyReLU, flatten, dense_hidden + LeakyReLU, dense_output.

    patches: (batch*spatial, K) bf16, wc: (K, C) bf16, bc: (1, C) f32,
    w1: (spatial*C, H) bf16, b1: (1, H) f32, w2: (H, N) bf16, b2: (1, N) f32.
    Returns (batch, N) f32.  The hidden/conv activations never leave VMEM.
    """
    K = patches.shape[1]
    C = wc.shape[1]
    H = w1.shape[1]
    N = w2.shape[1]
    TB, grid_b = _row_tiling(batch, _MAX_TB)
    kernel = functools.partial(_conv_dense_tail_kernel, tb=TB, spatial=spatial)
    return pl.pallas_call(
        kernel,
        out_shape=jax.ShapeDtypeStruct((batch, N), jnp.float32),
        grid=(grid_b,),
        in_specs=[
            pl.BlockSpec((TB * spatial, K), lambda i: (i, 0)),
            pl.BlockSpec((K, C), lambda i: (0, 0)),
            pl.BlockSpec((1, C), lambda i: (0, 0)),
            pl.BlockSpec((spatial * C, H), lambda i: (0, 0)),
            pl.BlockSpec((1, H), lambda i: (0, 0)),
            pl.BlockSpec((H, N), lambda i: (0, 0)),
            pl.BlockSpec((1, N), lambda i: (0, 0)),
        ],
        out_specs=pl.BlockSpec((TB, N), lambda i: (i, 0)),
        compiler_params=pltpu.CompilerParams(
            dimension_semantics=("parallel",)),
    )(patches, wc, bc, w1, b1, w2, b2)


# ------------------------------- JAX glue --------------------------------------
def im2col_3d_ndhwc(x, k, s):
    """x: (N, D, H, W, C) channels-last -> (N*Do*Ho*Wo, k^3*C), K-order (kd, kh, kw, C)."""
    N, D, H, W, C = x.shape
    Do = (D - k) // s + 1
    Ho = (H - k) // s + 1
    Wo = (W - k) // s + 1
    patches = []
    for kd in range(k):
        for kh in range(k):
            for kw in range(k):
                patches.append(
                    x[:, kd:kd + s * Do:s, kh:kh + s * Ho:s, kw:kw + s * Wo:s, :]
                )
    p = jnp.stack(patches, axis=4)                  # (N, Do, Ho, Wo, k^3, C)
    return p.reshape(N * Do * Ho * Wo, k * k * k * C), (N, Do, Ho, Wo)


def init_params(key, image_shape, n_channels, kernel_size, stride,
                hidden_size, n_classes):
    """Parameters in PyTorch layouts (Conv3d: (C_out,C_in,k,k,k), Linear: (out,in))."""
    params = {"conv_layers": []}
    shape = list(image_shape)
    for c_in, c_out in zip(n_channels[:-1], n_channels[1:]):
        key, kw_, kb_, kg_, kbe_ = jax.random.split(key, 5)
        layer = {
            "w": 0.1 * jax.random.normal(
                kw_, (c_out, c_in, kernel_size, kernel_size, kernel_size), jnp.float32),
            "b": 0.1 * jax.random.normal(kb_, (c_out,), jnp.float32),
            "bn_gamma": 1.0 + 0.1 * jax.random.normal(kg_, (c_out,), jnp.float32),
            "bn_beta": 0.1 * jax.random.normal(kbe_, (c_out,), jnp.float32),
            "bn_mean": jnp.zeros((c_out,), jnp.float32),   # running stats at __init__
            "bn_var": jnp.ones((c_out,), jnp.float32),
        }
        params["conv_layers"].append(layer)
        shape = [(d - kernel_size) // stride + 1 for d in shape]
    key, k1, k2, k3, k4 = jax.random.split(key, 5)
    conv_output_size = n_channels[-1] * shape[0] * shape[1] * shape[2]
    params["dense_hidden_w"] = 0.1 * jax.random.normal(
        k1, (hidden_size, conv_output_size), jnp.float32)
    params["dense_hidden_b"] = 0.1 * jax.random.normal(k2, (hidden_size,), jnp.float32)
    params["dense_output_w"] = 0.1 * jax.random.normal(
        k3, (n_classes, hidden_size), jnp.float32)
    params["dense_output_b"] = 0.1 * jax.random.normal(k4, (n_classes,), jnp.float32)
    params["final_shape"] = tuple(shape)
    params["final_channels"] = n_channels[-1]
    return params


def prepare_inference_params(params, kernel_size):
    """One-time weight folding / layout plumbing (runs once, outside the jitted forward).

    - folds BN scale into conv weight columns, BN shift + conv bias into one bias,
    - reorders conv weights to the channels-last im2col K-order (kd, kh, kw, C_in),
    - permutes dense_hidden's input columns from (C,D,H,W) to (D,H,W,C) so the NDHWC
      activation can be flattened directly (no activation transpose in the forward),
    - casts all GEMM (MXU) inputs to bf16; biases stay f32 for the f32 epilogue.
    """
    eps = 0.001
    prepared = {"conv": []}
    for layer in params["conv_layers"]:
        c_out = layer["w"].shape[0]
        inv_std = 1.0 / jnp.sqrt(layer["bn_var"] + eps)
        scale = layer["bn_gamma"] * inv_std                         # (C_out,)
        # (C_out, C_in, kd, kh, kw) -> (kd, kh, kw, C_in, C_out) -> (k^3*C_in, C_out)
        w_mat = jnp.transpose(layer["w"], (2, 3, 4, 1, 0)).reshape(-1, c_out)
        w_mat = (w_mat * scale[None, :]).astype(jnp.bfloat16)
        bias = ((layer["b"] - layer["bn_mean"]) * scale + layer["bn_beta"])
        prepared["conv"].append({"w": w_mat, "b": bias.reshape(1, c_out)})

    C = params["final_channels"]
    D, H, W = params["final_shape"]
    hidden = params["dense_hidden_w"].shape[0]
    n_classes = params["dense_output_w"].shape[0]
    # dense_hidden: (hidden, C*D*H*W) -> columns permuted to (D,H,W,C) flatten order.
    w_h = params["dense_hidden_w"].T.reshape(C, D, H, W, hidden)
    w_h = jnp.transpose(w_h, (1, 2, 3, 0, 4)).reshape(D * H * W * C, hidden)
    prepared["w_hidden"] = w_h.astype(jnp.bfloat16)
    prepared["b_hidden"] = params["dense_hidden_b"].reshape(1, hidden)
    prepared["w_out"] = params["dense_output_w"].T.astype(jnp.bfloat16)
    prepared["b_out"] = params["dense_output_b"].reshape(1, n_classes)
    return prepared


@functools.partial(jax.jit, static_argnames=("kernel_size", "stride"))
def nominal_net_forward(x, prepared, *, kernel_size, stride):
    """x: (N, C_in, D, H, W) f32 (PyTorch NCDHW) -> (N, n_classes) f32 (eval forward)."""
    # single layout transpose at entry; everything downstream is channels-last.
    x = jnp.transpose(x, (0, 2, 3, 4, 1))                           # NCDHW -> NDHWC
    conv_layers = prepared["conv"]
    # all conv layers but the last: standalone fused GEMM + BN + LeakyReLU kernels.
    for layer in conv_layers[:-1]:
        patches, (N, Do, Ho, Wo) = im2col_3d_ndhwc(x, kernel_size, stride)
        y = fused_conv_gemm(patches.astype(jnp.bfloat16), layer["w"], layer["b"])
        x = y.reshape(N, Do, Ho, Wo, -1)                            # stays NDHWC
    # last conv layer + flatten + dense_hidden + LeakyReLU + Dropout(id) + dense_output
    # all in ONE pallas_call: (N*S, C) reshaped to (N, S*C) is exactly the NDHWC
    # flatten, and dense_hidden's columns were pre-permuted to match.
    patches, (N, Do, Ho, Wo) = im2col_3d_ndhwc(x, kernel_size, stride)
    last = conv_layers[-1]
    out = fused_conv_dense_tail(
        patches.astype(jnp.bfloat16), last["w"], last["b"],
        prepared["w_hidden"], prepared["b_hidden"],
        prepared["w_out"], prepared["b_out"],
        batch=N, spatial=Do * Ho * Wo)
    return out


def reference_forward(x, prepared, kernel_size, stride):
    """Pure-JAX reference with the same bf16 quantization points as the kernels."""
    x = jnp.transpose(x, (0, 2, 3, 4, 1)).astype(jnp.float32)
    for layer in prepared["conv"]:
        patches, (N, Do, Ho, Wo) = im2col_3d_ndhwc(x, kernel_size, stride)
        p = patches.astype(jnp.bfloat16).astype(jnp.float32)
        y = p @ layer["w"].astype(jnp.float32) + layer["b"]
        y = jnp.where(y >= 0.0, y, 0.01 * y)
        x = y.reshape(N, Do, Ho, Wo, -1)
    flat = x.reshape(x.shape[0], -1).astype(jnp.bfloat16).astype(jnp.float32)
    h = flat @ prepared["w_hidden"].astype(jnp.float32) + prepared["b_hidden"]
    h = jnp.where(h >= 0.0, h, 0.01 * h)
    h = h.astype(jnp.bfloat16).astype(jnp.float32)
    return h @ prepared["w_out"].astype(jnp.float32) + prepared["b_out"]


if __name__ == "__main__":
    key = jax.random.PRNGKey(0)
    # NominalNet(image_shape=(8,8,8), n_channels=[1,4,8], kernel_size=3, stride=2,
    #            hidden_size=32, n_classes=5, dropout_rate=0.5)
    image_shape = (8, 8, 8)
    n_channels = [1, 4, 8]
    kernel_size, stride = 3, 2
    hidden_size, n_classes = 32, 5
    batch = 2

    key, kx, kp = jax.random.split(key, 3)
    x = jax.random.normal(kx, (batch, n_channels[0], *image_shape), jnp.float32)
    params = init_params(kp, image_shape, n_channels, kernel_size, stride,
                         hidden_size, n_classes)
    prepared = prepare_inference_params(params, kernel_size)

    out = nominal_net_forward(x, prepared, kernel_size=kernel_size, stride=stride)
    jax.block_until_ready(out)
    assert out.shape == (batch, n_classes), out.shape

    ref = reference_forward(x, prepared, kernel_size, stride)
    jax.block_until_ready(ref)
    assert jnp.allclose(out, ref, atol=1e-2, rtol=1e-2), (
        "mismatch vs pure-JAX reference", out, ref)
    print("KERNEL_OK")
</pallas_src>

<mosaic_0001>
module attributes {stable_mosaic.version = 11 : i64} {
  func.func @_conv_gemm_kernel(%arg0: i32, %arg1: memref<54x27xbf16, #tpu.memory_space<vmem>>, %arg2: memref<27x4xbf16, #tpu.memory_space<vmem>>, %arg3: memref<1x4xf32, #tpu.memory_space<vmem>>, %arg4: memref<54x4xf32, #tpu.memory_space<vmem>>) attributes {dimension_semantics = [#tpu.dimension_semantics<parallel>], iteration_bounds = array<i64: 1>, scalar_prefetch = 0 : i64, scratch_operands = 0 : i64, tpu.core_type = #tpu.core_type<tc>, window_params = [{transform_indices = @transform_0, window_bounds = array<i64: 54, 27>}, {pipeline_mode = #tpu.pipeline_mode<synchronous>, transform_indices = @transform_1, window_bounds = array<i64: 27, 4>}, {pipeline_mode = #tpu.pipeline_mode<synchronous>, transform_indices = @transform_2, window_bounds = array<i64: 1, 4>}, {transform_indices = @transform_3, window_bounds = array<i64: 54, 4>}]} {
    %c0 = arith.constant 0 : index
    %c0_0 = arith.constant 0 : index
    %0 = vector.load %arg1[%c0, %c0_0] : memref<54x27xbf16, #tpu.memory_space<vmem>>, vector<54x27xbf16>
    %c0_1 = arith.constant 0 : index
    %c0_2 = arith.constant 0 : index
    %1 = vector.load %arg2[%c0_1, %c0_2] : memref<27x4xbf16, #tpu.memory_space<vmem>>, vector<27x4xbf16>
    %cst = arith.constant dense<0.000000e+00> : vector<54x4xf32>
    %2 = tpu.matmul %0, %1, %cst {dimension_numbers = #tpu.dot_dimension_numbers<[1], [0], [0], [1], [0, 0, 1, 1], [], []>} : vector<54x27xbf16>, vector<27x4xbf16>, vector<54x4xf32> -> vector<54x4xf32>
    %c0_3 = arith.constant 0 : index
    %c0_4 = arith.constant 0 : index
    %3 = vector.load %arg3[%c0_3, %c0_4] : memref<1x4xf32, #tpu.memory_space<vmem>>, vector<1x4xf32>
    %4 = vector.broadcast %3 : vector<1x4xf32> to vector<54x4xf32>
    %5 = arith.addf %2, %4 : vector<54x4xf32>
    %cst_5 = arith.constant 0.000000e+00 : f32
    %6 = vector.broadcast %cst_5 : f32 to vector<54x4xf32>
    %7 = arith.cmpf oge, %5, %6 : vector<54x4xf32>
    %cst_6 = arith.constant 0.00999999977 : f32
    %8 = vector.broadcast %cst_6 : f32 to vector<54x4xf32>
    %9 = arith.mulf %8, %5 : vector<54x4xf32>
    %10 = arith.select %7, %5, %9 : vector<54x4xi1>, vector<54x4xf32>
    %c0_7 = arith.constant 0 : index
    %c0_8 = arith.constant 0 : index
    %11 = vector.load %arg4[%c0_7, %c0_8] : memref<54x4xf32, #tpu.memory_space<vmem>>, vector<54x4xf32>
    tpu.vector_store %arg4[%c0_7, %c0_8], %10 {strides = array<i32>} : memref<54x4xf32, #tpu.memory_space<vmem>>, vector<54x4xf32>,
    return
  }
  func.func @transform_0(%arg0: i32) -> (i32, i32) {
    %c0_i32 = arith.constant 0 : i32
    %c0_i32_0 = arith.constant 0 : i32
    return %arg0, %c0_i32 : i32, i32
  }
  func.func @transform_1(%arg0: i32) -> (i32, i32) {
    %c0_i32 = arith.constant 0 : i32
    %c0_i32_0 = arith.constant 0 : i32
    %c0_i32_1 = arith.constant 0 : i32
    return %c0_i32, %c0_i32_0 : i32, i32
  }
  func.func @transform_2(%arg0: i32) -> (i32, i32) {
    %c0_i32 = arith.constant 0 : i32
    %c0_i32_0 = arith.constant 0 : i32
    %c0_i32_1 = arith.constant 0 : i32
    return %c0_i32, %c0_i32_0 : i32, i32
  }
  func.func @transform_3(%arg0: i32) -> (i32, i32) {
    %c0_i32 = arith.constant 0 : i32
    %c0_i32_0 = arith.constant 0 : i32
    return %arg0, %c0_i32 : i32, i32
  }
}

module attributes {stable_mosaic.version = 11 : i64} {
  func.func @_conv_dense_tail_kernel(%arg0: i32, %arg1: memref<2x108xbf16, #tpu.memory_space<vmem>>, %arg2: memref<108x8xbf16, #tpu.memory_space<vmem>>, %arg3: memref<1x8xf32, #tpu.memory_space<vmem>>, %arg4: memref<8x32xbf16, #tpu.memory_space<vmem>>, %arg5: memref<1x32xf32, #tpu.memory_space<vmem>>, %arg6: memref<32x5xbf16, #tpu.memory_space<vmem>>, %arg7: memref<1x5xf32, #tpu.memory_space<vmem>>, %arg8: memref<2x5xf32, #tpu.memory_space<vmem>>) attributes {dimension_semantics = [#tpu.dimension_semantics<parallel>], iteration_bounds = array<i64: 1>, scalar_prefetch = 0 : i64, scratch_operands = 0 : i64, tpu.core_type = #tpu.core_type<tc>, window_params = [{transform_indices = @transform_0, window_bounds = array<i64: 2, 108>}, {pipeline_mode = #tpu.pipeline_mode<synchronous>, transform_indices = @transform_1, window_bounds = array<i64: 108, 8>}, {pipeline_mode = #tpu.pipeline_mode<synchronous>, transform_indices = @transform_2, window_bounds = array<i64: 1, 8>}, {pipeline_mode = #tpu.pipeline_mode<synchronous>, transform_indices = @transform_3, window_bounds = array<i64: 8, 32>}, {pipeline_mode = #tpu.pipeline_mode<synchronous>, transform_indices = @transform_4, window_bounds = array<i64: 1, 32>}, {pipeline_mode = #tpu.pipeline_mode<synchronous>, transform_indices = @transform_5, window_bounds = array<i64: 32, 5>}, {pipeline_mode = #tpu.pipeline_mode<synchronous>, transform_indices = @transform_6, window_bounds = array<i64: 1, 5>}, {transform_indices = @transform_7, window_bounds = array<i64: 2, 5>}]} {
    %c0 = arith.constant 0 : index
    %c0_0 = arith.constant 0 : index
    %0 = vector.load %arg1[%c0, %c0_0] : memref<2x108xbf16, #tpu.memory_space<vmem>>, vector<2x108xbf16>
    %c0_1 = arith.constant 0 : index
    %c0_2 = arith.constant 0 : index
    %1 = vector.load %arg2[%c0_1, %c0_2] : memref<108x8xbf16, #tpu.memory_space<vmem>>, vector<108x8xbf16>
    %cst = arith.constant dense<0.000000e+00> : vector<2x8xf32>
    %2 = tpu.matmul %0, %1, %cst {dimension_numbers = #tpu.dot_dimension_numbers<[1], [0], [0], [1], [0, 0, 1, 1], [], []>} : vector<2x108xbf16>, vector<108x8xbf16>, vector<2x8xf32> -> vector<2x8xf32>
    %c0_3 = arith.constant 0 : index
    %c0_4 = arith.constant 0 : index
    %3 = vector.load %arg3[%c0_3, %c0_4] : memref<1x8xf32, #tpu.memory_space<vmem>>, vector<1x8xf32>
    %4 = vector.broadcast %3 : vector<1x8xf32> to vector<2x8xf32>
    %5 = arith.addf %2, %4 : vector<2x8xf32>
    %cst_5 = arith.constant 0.000000e+00 : f32
    %6 = vector.broadcast %cst_5 : f32 to vector<2x8xf32>
    %7 = arith.cmpf oge, %5, %6 : vector<2x8xf32>
    %cst_6 = arith.constant 0.00999999977 : f32
    %8 = vector.broadcast %cst_6 : f32 to vector<2x8xf32>
    %9 = arith.mulf %8, %5 : vector<2x8xf32>
    %10 = arith.select %7, %5, %9 : vector<2x8xi1>, vector<2x8xf32>
    %11 = arith.truncf %10 : vector<2x8xf32> to vector<2x8xbf16>
    %c0_7 = arith.constant 0 : index
    %c0_8 = arith.constant 0 : index
    %12 = vector.load %arg4[%c0_7, %c0_8] : memref<8x32xbf16, #tpu.memory_space<vmem>>, vector<8x32xbf16>
    %cst_9 = arith.constant dense<0.000000e+00> : vector<2x32xf32>
    %13 = tpu.matmul %11, %12, %cst_9 {dimension_numbers = #tpu.dot_dimension_numbers<[1], [0], [0], [1], [0, 0, 1, 1], [], []>} : vector<2x8xbf16>, vector<8x32xbf16>, vector<2x32xf32> -> vector<2x32xf32>
    %c0_10 = arith.constant 0 : index
    %c0_11 = arith.constant 0 : index
    %14 = vector.load %arg5[%c0_10, %c0_11] : memref<1x32xf32, #tpu.memory_space<vmem>>, vector<1x32xf32>
    %15 = vector.broadcast %14 : vector<1x32xf32> to vector<2x32xf32>
    %16 = arith.addf %13, %15 : vector<2x32xf32>
    %cst_12 = arith.constant 0.000000e+00 : f32
    %17 = vector.broadcast %cst_12 : f32 to vector<2x32xf32>
    %18 = arith.cmpf oge, %16, %17 : vector<2x32xf32>
    %cst_13 = arith.constant 0.00999999977 : f32
    %19 = vector.broadcast %cst_13 : f32 to vector<2x32xf32>
    %20 = arith.mulf %19, %16 : vector<2x32xf32>
    %21 = arith.select %18, %16, %20 : vector<2x32xi1>, vector<2x32xf32>
    %22 = arith.truncf %21 : vector<2x32xf32> to vector<2x32xbf16>
    %c0_14 = arith.constant 0 : index
    %c0_15 = arith.constant 0 : index
    %23 = vector.load %arg6[%c0_14, %c0_15] : memref<32x5xbf16, #tpu.memory_space<vmem>>, vector<32x5xbf16>
    %cst_16 = arith.constant dense<0.000000e+00> : vector<2x5xf32>
    %24 = tpu.matmul %22, %23, %cst_16 {dimension_numbers = #tpu.dot_dimension_numbers<[1], [0], [0], [1], [0, 0, 1, 1], [], []>} : vector<2x32xbf16>, vector<32x5xbf16>, vector<2x5xf32> -> vector<2x5xf32>
    %c0_17 = arith.constant 0 : index
    %c0_18 = arith.constant 0 : index
    %25 = vector.load %arg7[%c0_17, %c0_18] : memref<1x5xf32, #tpu.memory_space<vmem>>, vector<1x5xf32>
    %26 = vector.broadcast %25 : vector<1x5xf32> to vector<2x5xf32>
    %27 = arith.addf %24, %26 : vector<2x5xf32>
    %c0_19 = arith.constant 0 : index
    %c0_20 = arith.constant 0 : index
    %28 = vector.load %arg8[%c0_19, %c0_20] : memref<2x5xf32, #tpu.memory_space<vmem>>, vector<2x5xf32>
    tpu.vector_store %arg8[%c0_19, %c0_20], %27 {strides = array<i32>} : memref<2x5xf32, #tpu.memory_space<vmem>>, vector<2x5xf32>,
    return
  }
  func.func @transform_0(%arg0: i32) -> (i32, i32) {
    %c0_i32 = arith.constant 0 : i32
    %c0_i32_0 = arith.constant 0 : i32
    return %arg0, %c0_i32 : i32, i32
  }
  func.func @transform_1(%arg0: i32) -> (i32, i32) {
    %c0_i32 = arith.constant 0 : i32
    %c0_i32_0 = arith.constant 0 : i32
    %c0_i32_1 = arith.constant 0 : i32
    return %c0_i32, %c0_i32_0 : i32, i32
  }
  func.func @transform_2(%arg0: i32) -> (i32, i32) {
    %c0_i32 = arith.constant 0 : i32
    %c0_i32_0 = arith.constant 0 : i32
    %c0_i32_1 = arith.constant 0 : i32
    return %c0_i32, %c0_i32_0 : i32, i32
  }
  func.func @transform_3(%arg0: i32) -> (i32, i32) {
    %c0_i32 = arith.constant 0 : i32
    %c0_i32_0 = arith.constant 0 : i32
    %c0_i32_1 = arith.constant 0 : i32
    return %c0_i32, %c0_i32_0 : i32, i32
  }
  func.func @transform_4(%arg0: i32) -> (i32, i32) {
    %c0_i32 = arith.constant 0 : i32
    %c0_i32_0 = arith.constant 0 : i32
    %c0_i32_1 = arith.constant 0 : i32
    return %c0_i32, %c0_i32_0 : i32, i32
  }
  func.func @transform_5(%arg0: i32) -> (i32, i32) {
    %c0_i32 = arith.constant 0 : i32
    %c0_i32_0 = arith.constant 0 : i32
    %c0_i32_1 = arith.constant 0 : i32
    return %c0_i32, %c0_i32_0 : i32, i32
  }
  func.func @transform_6(%arg0: i32) -> (i32, i32) {
    %c0_i32 = arith.constant 0 : i32
    %c0_i32_0 = arith.constant 0 : i32
    %c0_i32_1 = arith.constant 0 : i32
    return %c0_i32, %c0_i32_0 : i32, i32
  }
  func.func @transform_7(%arg0: i32) -> (i32, i32) {
    %c0_i32 = arith.constant 0 : i32
    %c0_i32_0 = arith.constant 0 : i32
    return %arg0, %c0_i32 : i32, i32
  }
}

</mosaic_0001>

<bundles_post_ra>
// kernel: nominal_net_forward.2
= control target key start
LH: loop header
LB: loop body
LE: loop exit
PB: predicated region body
PF: predicated region fallthrough
CT: control target
= control target key end

     0   :  { %vm72_vm0 = vcmask 1044480   ;;  %vm73_vm1 = vcmask 1045504   ;;  %v178_v2 = vmov 65535   ;;  %vm59_vm2 = vcmask 220160   ;;  %s251_s1 = inlined_call_operand.vmem [shape: bf16[27,4], index: 1, kind: input, shape index: {}]   ;;  %s252_s0 = inlined_call_operand.vmem [shape: bf16[54,27], index: 0, kind: input, shape index: {}]   ;;  %s253_s2 = inlined_call_operand.vmem [shape: f32[1,4], index: 2, kind: input, shape index: {}]   ;;  %s254_s3 = inlined_call_operand.vmem [shape: f32[54,4], index: 3, kind: output, shape index: {}]  }
   0x1   :  { %v159_v0 = vld [vmem:[%s251_s1 + $0x8] sm:$0xf]  ;;  %v169_v1 = vld [vmem:[%s251_s1 + $0x8] sm:$0x30]  ;;  %v74_v3 = vsel %vm72_vm0, 4294967295, %v178_v2  ;;  %v168_v8 = vld [vmem:[%s251_s1] sm:$0xff] }
   0x2   :  { %v160_v4 = vor.u32 %v169_v1, %v159_v0  ;;  %v75_v5 = vsel %vm73_vm1, %v74_v3, 0  ;;  %v21_v6 = vld [vmem:[%s252_s0 + $0x18] sm:$0x7]  ;;  %v165_v10 = vld [vmem:[%s252_s0] sm:$0xff]  ;;  %v166_v11 = vld [vmem:[%s252_s0 + $0x8] sm:$0xff]  ;;  %vm128_vm3 = vcmask 31744  }
   0x3   :  { %v43_v9 = vunpack.c.l.b16 %v21_v6  ;;  %v167_v12 = vld [vmem:[%s252_s0 + $0x10] sm:$0xff]  ;;  %v177_v14 = vld [vmem:[%s253_s2] ss:$0 sm:$0xff]  ;;  %vm135_vm6 = vcmask 29696  }
   0x4   :  { %v77_v7 = vand.u32 %v160_v4, %v75_v5 }
   0x5   :  { %v47_v13 = vpack.c.b16 %v43_v9, %v43_v9 }
   0x6   :  { %85 = vmatpush.bf16.msra.mxu0 %v77_v7  ;;  %170 = vmatpush.bf16.msra.mxu1 %v77_v7 }
   0x7   :  { %171 = vmatpush.bf16.msra.mxu2 %v77_v7  ;;  %172 = vmatpush.bf16.msra.mxu3 %v77_v7 }
   0xa   :  { %86 = vmatpush.bf16.msra.mxu0 %v168_v8  ;;  %173 = vmatpush.bf16.msra.mxu1 %v168_v8 }
   0xb   :  { %174 = vmatpush.bf16.msra.mxu2 %v168_v8  ;;  %175 = vmatpush.bf16.msra.mxu3 %v168_v8 }
   0xd   :  { %161 = vmatmul.msk.bf16.vlgmr.msra.gmra.mxu0 %vm59_vm2, %v165_v10  ;;  %162 = vmatmul.msk.bf16.vlgmr.msra.gmra.mxu1 %vm59_vm2, %v166_v11 }
   0xe   :  { %163 = vmatmul.msk.bf16.vlgmr.msra.gmra.mxu2 %vm59_vm2, %v167_v12  ;;  %164 = vmatmul.msk.bf16.vlgmr.msra.gmra.mxu3 %vm59_vm2, %v47_v13 }
  0x8a   :  { %v88_v15 = vpop.f32.mrf.mxu0  ;;  %v93_v16 = vpop.f32.mrf.mxu1 }
  0x8b   :  { %v89_v17 = vadd.f32 %v177_v14, %v88_v15  ;;  %v94_v18 = vadd.f32 %v177_v14, %v93_v16 }
  0x8d   :  { %vm107_vm4 = vcmp.ge.f32.partialorder %v89_v17, 0.0  ;;  %v114_v19 = vmul.f32 0.01, %v89_v17  ;;  %vm109_vm5 = vcmp.ge.f32.partialorder %v94_v18, 0.0  ;;  %v116_v20 = vmul.f32 0.01, %v94_v18 }
  0x8f   :  { %v121_v21 = vsel %vm107_vm4, %v89_v17, %v114_v19  ;;  %v123_v22 = vsel %vm109_vm5, %v94_v18, %v116_v20 }
  0x90   :  { %129 = vst.msk [vmem:[%s254_s3] sm:$0xff] %vm128_vm3, %v121_v21 }
  0x91   :  { %131 = vst.msk [vmem:[%s254_s3 + $0x10] sm:$0xff] %vm128_vm3, %v123_v22  ;;  %v98_v23 = vpop.f32.mrf.mxu2  ;;  %v103_v24 = vpop.f32.mrf.mxu3 }
  0x92   :  { %v99_v25 = vadd.f32 %v177_v14, %v98_v23  ;;  %v104_v26 = vadd.f32 %v177_v14, %v103_v24  ;;  %v90_v27 = vpop.f32.mrf.mxu0  ;;  %v95_v28 = vpop.f32.mrf.mxu1 }
  0x93   :  { %v91_v29 = vadd.f32 %v177_v14, %v90_v27  ;;  %v96_v30 = vadd.f32 %v177_v14, %v95_v28 }
  0x94   :  { %vm111_vm7 = vcmp.ge.f32.partialorder %v99_v25, 0.0  ;;  %v118_v31 = vmul.f32 0.01, %v99_v25  ;;  %vm113_vm8 = vcmp.ge.f32.partialorder %v104_v26, 0.0  ;;  %v120_v32 = vmul.f32 0.01, %v104_v26 }
  0x95   :  { %vm108_vm9 = vcmp.ge.f32.partialorder %v91_v29, 0.0  ;;  %v115_v33 = vmul.f32 0.01, %v91_v29  ;;  %vm110_vm10 = vcmp.ge.f32.partialorder %v96_v30, 0.0  ;;  %v117_v34 = vmul.f32 0.01, %v96_v30 }
  0x96   :  { %v125_v35 = vsel %vm111_vm7, %v99_v25, %v118_v31  ;;  %v127_v36 = vsel %vm113_vm8, %v104_v26, %v120_v32 }
  0x97   :  { %133 = vst.msk [vmem:[%s254_s3 + $0x20] sm:$0xff] %vm128_vm3, %v125_v35  ;;  %v122_v37 = vsel %vm108_vm9, %v91_v29, %v115_v33  ;;  %v124_v38 = vsel %vm110_vm10, %v96_v30, %v117_v34 }
  0x98   :  { %136 = vst.msk [vmem:[%s254_s3 + $0x30] sm:$0x3f] %vm135_vm6, %v127_v36 }
  0x99   :  { %130 = vst.msk [vmem:[%s254_s3 + $0x8] sm:$0xff] %vm128_vm3, %v122_v37  ;;  %v100_v39 = vpop.f32.mrf.mxu2  ;;  %v105_v40 = vpop.f32.mrf.mxu3 }
  0x9a   :  { %132 = vst.msk [vmem:[%s254_s3 + $0x18] sm:$0xff] %vm128_vm3, %v124_v38  ;;  %v101_v41 = vadd.f32 %v177_v14, %v100_v39 }
  0x9c   :  { %vm112_vm11 = vcmp.ge.f32.partialorder %v101_v41, 0.0  ;;  %v119_v42 = vmul.f32 0.01, %v101_v41 }
  0x9e   :  { %v126_v43 = vsel %vm112_vm11, %v101_v41, %v119_v42 }
  0x9f   :  { %134 = vst.msk [vmem:[%s254_s3 + $0x28] sm:$0xff] %vm128_vm3, %v126_v43 }

// kernel: nominal_net_forward.3
= control target key start
LH: loop header
LB: loop body
LE: loop exit
PB: predicated region body
PF: predicated region fallthrough
CT: control target
= control target key end

     0   :  { %vm92_vm0 = vcmask 1045504   ;;  %s365_s0 = inlined_call_operand.vmem [shape: bf16[2,108], index: 0, kind: input, shape index: {}]   ;;  %s366_s1 = inlined_call_operand.vmem [shape: bf16[108,8], index: 1, kind: input, shape index: {}]   ;;  %s367_s2 = inlined_call_operand.vmem [shape: f32[1,8], index: 2, kind: input, shape index: {}]   ;;  %s368_s3 = inlined_call_operand.vmem [shape: bf16[8,32], index: 3, kind: input, shape index: {}]   ;;  %s369_s4 = inlined_call_operand.vmem [shape: f32[1,32], index: 4, kind: input, shape index: {}]   ;;  %s370_s5 = inlined_call_operand.vmem [shape: bf16[32,5], index: 5, kind: input, shape index: {}]   ;;  %s371_s6 = inlined_call_operand.vmem [shape: f32[1,5], index: 6, kind: input, shape index: {}]   ;;  %s372_s7 = inlined_call_operand.hbm [shape: f32[2,5], index: 7, kind: output, shape index: {}]  }
   0x1   :  { %v224_v0 = vld [vmem:[%s366_s1 + $0x30] sm:$0xf]  ;;  %v243_v1 = vld [vmem:[%s366_s1 + $0x30] sm:$0x30]  ;;  %v242_v4 = vld [vmem:[%s366_s1 + $0x28] sm:$0xff] }
   0x2   :  { %v225_v2 = vor.u32 %v243_v1, %v224_v0 }
   0x4   :  { %v94_v3 = vsel %vm92_vm0, %v225_v2, 0 }
   0x5   :  { %97 = vmatpush.bf16.msra.mxu0 %v94_v3 }
   0x6   :  { %12 = vsyncpa [#allocation3], 0  ;;  %v241_v5 = vld [vmem:[%s366_s1 + $0x20] sm:$0xff]  ;;  %v240_v6 = vld [vmem:[%s366_s1 + $0x18] sm:$0xff]  ;;  %vm88_vm1 = vcmask 883712   ;;  %vm122_vm2 = vcmask 1043456  }
   0x7   :  { %v239_v7 = vld [vmem:[%s366_s1 + $0x10] sm:$0xff]  ;;  %v238_v8 = vld [vmem:[%s366_s1 + $0x8] sm:$0xff]  ;;  %v237_v9 = vld [vmem:[%s366_s1] sm:$0xff]  ;;  %vm118_vm4 = vcmask 64512   ;;  %vm163_vm6 = vcmask 261120   ;;  %s276_s27 = smov [#allocation2]  }
   0x8   :  { %v28_v10 = vld [vmem:[%s365_s0] sm:$0x1]  ;;  %v245_v20 = vld [vmem:[%s370_s5 + $0x8] sm:$0xff]  ;;  %s189_s30 = sshll.u32 %s372_s7, 4  ;;  %vm180_vm7 = vcmask 33792   ;;  %s190_s30 = int_to_ptr.hbm [resolvable:$true] %s189_s30 }
   0x9   :  { %98 = vmatpush.bf16.msra.mxu0 %v242_v4  ;;  %v113_v11 = vld [vmem:[%s368_s3] sm:$0xf]  ;;  %173 = vmatpush.bf16.msra.mxu2 %v245_v20 }
   0xa   :  { %v124_v12 = vsel %vm122_vm2, %v113_v11, 0  ;;  %v247_v13 = vld [vmem:[%s367_s2] ss:$0 sm:$0xff] }
   0xb   :  { %133 = vmatpush.bf16.msra.mxu1 %v124_v12  ;;  %v244_v21 = vld [vmem:[%s370_s5] sm:$0xff]  ;;  %s187_s5 = sshll.u32 %s276_s27, 4  ;;  %s188_s5 = int_to_ptr.vmem [resolvable:$true] %s187_s5 }
   0xc   :  { %v248_v22 = vld [vmem:[%s369_s4] ss:$0 sm:$0xff] }
   0xd   :  { %99 = vmatpush.bf16.msra.mxu0 %v241_v5  ;;  %174 = vmatpush.bf16.msra.mxu2 %v244_v21  ;;  %v249_v29 = vld [vmem:[%s371_s6] ss:$0 sm:$0xff] }
  0x11   :  { %100 = vmatpush.bf16.msra.mxu0 %v240_v6 }
  0x15   :  { %101 = vmatpush.bf16.msra.mxu0 %v239_v7 }
  0x19   :  { %102 = vmatpush.bf16.msra.mxu0 %v238_v8 }
  0x1d   :  { %103 = vmatpush.bf16.msra.mxu0 %v237_v9 }
  0x20   :  { %226 = vmatmul.msk.bf16.vlgmr.msra.gmra.mxu0 %vm88_vm1, %v28_v10 }
  0x9d   :  { %v105_v14 = vpop.f32.mrf.mxu0 }
  0x9e   :  { %v106_v15 = vadd.f32 %v247_v13, %v105_v14 }
  0xa0   :  { %vm109_vm3 = vcmp.ge.f32.partialorder %v106_v15, 0.0  ;;  %v110_v16 = vmul.f32 0.01, %v106_v15 }
  0xa2   :  { %v111_v17 = vsel %vm109_vm3, %v106_v15, %v110_v16 }
  0xa3   :  { %v112_v18 = vpack.c.bf16 %v111_v17, %v111_v17 }
  0xa5   :  { %v107_v19 = vpop.f32.mrf.mxu0  ;;  %227 = vmatmul.msk.bf16.vlgmr.msra.gmra.mxu1 %vm118_vm4, %v112_v18 }
 0x122   :  { %v135_v23 = vpop.f32.mrf.mxu1 }
 0x123   :  { %v136_v24 = vadd.f32 %v248_v22, %v135_v23 }
 0x125   :  { %vm139_vm5 = vcmp.ge.f32.partialorder %v136_v24, 0.0  ;;  %v140_v25 = vmul.f32 0.01, %v136_v24 }
 0x127   :  { %v141_v26 = vsel %vm139_vm5, %v136_v24, %v140_v25 }
 0x128   :  { %v142_v27 = vpack.c.bf16 %v141_v26, %v141_v26 }
 0x12a   :  { %v137_v28 = vpop.f32.mrf.mxu1  ;;  %236 = vmatmul.msk.bf16.vlgmr.msra.gmra.mxu2 %vm163_vm6, %v142_v27 }
 0x1ad   :  { %v176_v30 = vpop.f32.mrf.mxu2 }
 0x1ae   :  { %v177_v31 = vadd.f32 %v249_v29, %v176_v30 }
 0x1b0   :  { %181 = vst.msk [vmem:[#allocation2] sm:$0x3] %vm180_vm7, %v177_v31 }
 0x1b1   :  { %192 = dma.vmem_to_hbm [thread:$0]  %s188_s5, 32, %s190_s30, [#allocation3]  }
 0x1b5   :  { %v178_v32 = vpop.f32.mrf.mxu2 }
 0x1b6   :  { %274 = dma.done.wait [#allocation3], 32  }
 0x1b7   :  { %275 = vsyncadd [#allocation3], 4294967264 }
 0x1b8   :  { %197 = vsyncpa [#allocation3], 1 }

</bundles_post_ra>
